<compile_context>
chip_gen: v6e
topology: v6e:2x2x1
jax: 0.10.0
libtpu: 0.0.40
codegen_flags: <defaults>
</compile_context>

<pallas_src>
import jax
import jax.numpy as jnp
import numpy as np
from jax.experimental import pallas as pl
from jax.experimental.pallas import tpu as pltpu


def _round_up(v, m):
    return (v + m - 1) // m * m


def _make_kernel(H, W):
    """Kernel closure.  W = k*H is the packed lane width (k rows per vreg row)."""
    packed = W != H
    k = W // H
    kp = max(k, 8)  # pad segment count to a sublane-friendly size (zero cols/rows)

    def kernel(sv_ref, gv_ref, w_ref, b_ref, out_ref):
        sv = sv_ref[...].astype(jnp.float32)          # (Mt, W)
        gv = gv_ref[...].astype(jnp.float32)          # (Mt, W)
        w = w_ref[...]                                # (4, W) f32

        # Gate logits: Linear([self, gen]) decomposed into per-stream products.
        xm = sv * w[0:1, :] + gv * w[1:2, :]          # context gate terms
        xa = sv * w[2:3, :] + gv * w[3:4, :]          # answer  gate terms

        if packed:
            # k original rows live in one packed row (H lanes per segment).
            # Segment-sum (W -> kp) then segment-broadcast (kp -> W) via 0/1
            # block-indicator matmuls.  HIGHEST precision keeps the f32 sums
            # exact to f32 rounding; FLOPs are negligible (kp <= 8 here).
            lane = jax.lax.broadcasted_iota(jnp.int32, (W, kp), 0)
            seg = jax.lax.broadcasted_iota(jnp.int32, (W, kp), 1)
            R = ((lane >= seg * H) & (lane < (seg + 1) * H)).astype(jnp.float32)
            lane_t = jax.lax.broadcasted_iota(jnp.int32, (kp, W), 1)
            seg_t = jax.lax.broadcasted_iota(jnp.int32, (kp, W), 0)
            RT = ((lane_t >= seg_t * H) &
                  (lane_t < (seg_t + 1) * H)).astype(jnp.float32)

            def seg_sum_bcast(x):
                s = jnp.dot(x, R, precision=jax.lax.Precision.HIGHEST,
                            preferred_element_type=jnp.float32)      # (Mt, kp)
                return jnp.dot(s, RT, precision=jax.lax.Precision.HIGHEST,
                               preferred_element_type=jnp.float32)   # (Mt, W)

            lm = seg_sum_bcast(xm)
            la = seg_sum_bcast(xa)
        else:
            # Lane reduce (XLU) - memory-bound kernel, no MXU needed.
            lm = jnp.sum(xm, axis=-1, keepdims=True)  # (Mt, 1)
            la = jnp.sum(xa, axis=-1, keepdims=True)

        g_m = jax.nn.sigmoid(lm + b_ref[0])
        g_a = jax.nn.sigmoid(la + b_ref[1])
        out_ref[...] = (g_m * sv + g_a * gv).astype(out_ref.dtype)

    return kernel


def attention_gate(self_vector, generation_vector, params):
    """Pallas forward of Attention_Gate.

    self_vector, generation_vector: (B, S, H) in the caller's dtype
    params: Wc (1, 2H), bc (1,), Wa (1, 2H), ba (1,)   [torch nn.Linear layout]
    """
    B, S, H = self_vector.shape
    M = B * S
    out_dtype = jnp.result_type(self_vector.dtype, generation_vector.dtype)
    sv = jnp.asarray(self_vector, out_dtype)
    gv = jnp.asarray(generation_vector, out_dtype)

    # Lane packing: k rows per 128-lane vreg row when H divides 128 cleanly.
    if H < 128 and 128 % H == 0 and M % (128 // H) == 0:
        k = 128 // H
    else:
        k = 1
    W = k * H
    Mr = M // k

    sv = sv.reshape(Mr, W)          # free, row-major contiguous
    gv = gv.reshape(Mr, W)

    # Gate weights: split the (1, 2H) concat-weights per stream, stack, tile.
    Wc = jnp.asarray(params["Wc"], jnp.float32)
    Wa = jnp.asarray(params["Wa"], jnp.float32)
    w_stack = jnp.concatenate(
        [Wc[:, :H], Wc[:, H:], Wa[:, :H], Wa[:, H:]], axis=0)        # (4, H)
    if k > 1:
        w_stack = jnp.tile(w_stack, (1, k))                          # (4, W)
    b = jnp.concatenate(
        [jnp.asarray(params["bc"], jnp.float32),
         jnp.asarray(params["ba"], jnp.float32)])                    # (2,) -> SMEM

    # Row tile: ~1 MiB of f32-equivalent per stream tile, multiple of 8 rows,
    # and >= 4 grid steps when rows allow (2 per TensorCore on v7x megacore).
    target_tile_bytes = 1 << 20
    row_bytes = W * 4                           # in-kernel intermediates are f32
    if Mr <= 8:
        Mt = Mr                                 # single block == full row extent
    else:
        rows_by_target = max(8, (target_tile_bytes // row_bytes) // 8 * 8)
        rows_by_split = max(8, _round_up(pl.cdiv(Mr, 4), 8))
        Mt = int(min(rows_by_target, rows_by_split))

    grid = (pl.cdiv(Mr, Mt),)                   # ragged last block handled by Pallas

    out = pl.pallas_call(
        _make_kernel(H, W),
        out_shape=jax.ShapeDtypeStruct((Mr, W), out_dtype),
        grid_spec=pltpu.PrefetchScalarGridSpec(
            num_scalar_prefetch=0,
            grid=grid,
            in_specs=[
                pl.BlockSpec((Mt, W), lambda i: (i, 0)),     # self rows
                pl.BlockSpec((Mt, W), lambda i: (i, 0)),     # gen rows
                pl.BlockSpec((4, W), lambda i: (0, 0)),      # stacked gate weights
                pl.BlockSpec(memory_space=pltpu.MemorySpace.SMEM),  # biases
            ],
            out_specs=pl.BlockSpec((Mt, W), lambda i: (i, 0)),
        ),
        compiler_params=pltpu.CompilerParams(
            dimension_semantics=("parallel",),
            vmem_limit_bytes=32 * 1024 * 1024),
    )(sv, gv, w_stack, b)

    return out.reshape(B, S, H)


def reference(self_vector, generation_vector, params):
    """Pure-JAX mirror of the torch forward (f32, exact matmul precision)."""
    B, S, H = self_vector.shape
    s2 = jnp.asarray(self_vector, jnp.float32).reshape(-1, H)
    g2 = jnp.asarray(generation_vector, jnp.float32).reshape(-1, H)
    common = jnp.concatenate([s2, g2], axis=-1)                      # (M, 2H)
    hp = jax.lax.Precision.HIGHEST
    g_m = jax.nn.sigmoid(jnp.dot(common, params["Wc"].T, precision=hp)
                         + params["bc"])                             # (M, 1)
    g_a = jax.nn.sigmoid(jnp.dot(common, params["Wa"].T, precision=hp)
                         + params["ba"])                             # (M, 1)
    out = g_m * s2 + g_a * g2
    return out.reshape(B, S, H)


if __name__ == "__main__":
    def make_case(key, B, S, H, dtype):
        keys = jax.random.split(key, 6)
        kb = 1.0 / np.sqrt(2 * H)   # torch nn.Linear default init bound
        params = {
            "Wc": jax.random.uniform(keys[0], (1, 2 * H), jnp.float32, -kb, kb),
            "bc": jax.random.uniform(keys[1], (1,), jnp.float32, -kb, kb),
            "Wa": jax.random.uniform(keys[2], (1, 2 * H), jnp.float32, -kb, kb),
            "ba": jax.random.uniform(keys[3], (1,), jnp.float32, -kb, kb),
        }
        sv = jax.random.normal(keys[4], (B, S, H), jnp.float32).astype(dtype)
        gv = jax.random.normal(keys[5], (B, S, H), jnp.float32).astype(dtype)
        return params, sv, gv

    key = jax.random.PRNGKey(0)
    cases = [
        # (B,  S,   H,  dtype,        rtol, atol)
        (2,   8,  32, jnp.float32,  1e-5, 1e-5),   # spec shape: packed k=4, 1 block
        (4, 100,  64, jnp.float32,  1e-5, 1e-5),   # packed k=2, tiled + ragged grid
        (3,  50, 128, jnp.float32,  1e-5, 1e-5),   # unpacked, tiled + ragged grid
        (2,   8,  32, jnp.bfloat16, 1e-2, 1e-2),   # bf16 I/O passthrough
    ]
    for (B, S, H, dtype, rtol, atol) in cases:
        key, sub = jax.random.split(key)
        params, sv, gv = make_case(sub, B, S, H, dtype)
        out = jax.block_until_ready(attention_gate(sv, gv, params))
        assert out.shape == (B, S, H)
        assert out.dtype == dtype
        ref = reference(sv, gv, params)   # reference upcasts the same inputs to f32
        np.testing.assert_allclose(np.asarray(jnp.asarray(out, jnp.float32)),
                                   np.asarray(ref), rtol=rtol, atol=atol)
    print("KERNEL_OK")
</pallas_src>

<mosaic_0001>
module attributes {stable_mosaic.version = 11 : i64} {
  func.func @kernel(%arg0: i32, %arg1: memref<4x128xf32, #tpu.memory_space<vmem>>, %arg2: memref<4x128xf32, #tpu.memory_space<vmem>>, %arg3: memref<4x128xf32, #tpu.memory_space<vmem>>, %arg4: memref<2xf32, #tpu.memory_space<smem>>, %arg5: memref<4x128xf32, #tpu.memory_space<vmem>>) attributes {dimension_semantics = [#tpu.dimension_semantics<parallel>], iteration_bounds = array<i64: 1>, scalar_prefetch = 0 : i64, scratch_operands = 0 : i64, tpu.core_type = #tpu.core_type<tc>, window_params = [{transform_indices = @transform_0, window_bounds = array<i64: 4, 128>}, {transform_indices = @transform_1, window_bounds = array<i64: 4, 128>}, {pipeline_mode = #tpu.pipeline_mode<synchronous>, transform_indices = @transform_2, window_bounds = array<i64: 4, 128>}, {transform_indices = @transform_3, window_bounds = array<i64: 2>}, {transform_indices = @transform_4, window_bounds = array<i64: 4, 128>}]} {
    %c0 = arith.constant 0 : index
    %c0_0 = arith.constant 0 : index
    %0 = vector.load %arg1[%c0, %c0_0] : memref<4x128xf32, #tpu.memory_space<vmem>>, vector<4x128xf32>
    %c0_1 = arith.constant 0 : index
    %c0_2 = arith.constant 0 : index
    %1 = vector.load %arg2[%c0_1, %c0_2] : memref<4x128xf32, #tpu.memory_space<vmem>>, vector<4x128xf32>
    %c0_3 = arith.constant 0 : index
    %c0_4 = arith.constant 0 : index
    %2 = vector.load %arg3[%c0_3, %c0_4] : memref<4x128xf32, #tpu.memory_space<vmem>>, vector<4x128xf32>
    %3 = vector.extract_strided_slice %2 {offsets = [0, 0], sizes = [1, 128], strides = [1, 1]} : vector<4x128xf32> to vector<1x128xf32>
    %4 = vector.broadcast %3 : vector<1x128xf32> to vector<4x128xf32>
    %5 = arith.mulf %0, %4 : vector<4x128xf32>
    %6 = vector.extract_strided_slice %2 {offsets = [1, 0], sizes = [1, 128], strides = [1, 1]} : vector<4x128xf32> to vector<1x128xf32>
    %7 = vector.broadcast %6 : vector<1x128xf32> to vector<4x128xf32>
    %8 = arith.mulf %1, %7 : vector<4x128xf32>
    %9 = arith.addf %5, %8 : vector<4x128xf32>
    %10 = vector.extract_strided_slice %2 {offsets = [2, 0], sizes = [1, 128], strides = [1, 1]} : vector<4x128xf32> to vector<1x128xf32>
    %11 = vector.broadcast %10 : vector<1x128xf32> to vector<4x128xf32>
    %12 = arith.mulf %0, %11 : vector<4x128xf32>
    %13 = vector.extract_strided_slice %2 {offsets = [3, 0], sizes = [1, 128], strides = [1, 1]} : vector<4x128xf32> to vector<1x128xf32>
    %14 = vector.broadcast %13 : vector<1x128xf32> to vector<4x128xf32>
    %15 = arith.mulf %1, %14 : vector<4x128xf32>
    %16 = arith.addf %12, %15 : vector<4x128xf32>
    %17 = tpu.iota {dimensions = array<i32: 0>} : vector<128x8xi32>
    %18 = tpu.iota {dimensions = array<i32: 1>} : vector<128x8xi32>
    %c32_i32 = arith.constant 32 : i32
    %19 = vector.broadcast %c32_i32 : i32 to vector<128x8xi32>
    %20 = arith.muli %18, %19 : vector<128x8xi32>
    %21 = arith.cmpi sge, %17, %20 : vector<128x8xi32>
    %c1_i32 = arith.constant 1 : i32
    %22 = vector.broadcast %c1_i32 : i32 to vector<128x8xi32>
    %23 = arith.addi %18, %22 : vector<128x8xi32>
    %c32_i32_5 = arith.constant 32 : i32
    %24 = vector.broadcast %c32_i32_5 : i32 to vector<128x8xi32>
    %25 = arith.muli %23, %24 : vector<128x8xi32>
    %26 = arith.cmpi slt, %17, %25 : vector<128x8xi32>
    %27 = arith.andi %21, %26 : vector<128x8xi1>
    %28 = arith.extui %27 : vector<128x8xi1> to vector<128x8xi32>
    %29 = arith.sitofp %28 : vector<128x8xi32> to vector<128x8xf32>
    %30 = tpu.iota {dimensions = array<i32: 1>} : vector<8x128xi32>
    %31 = tpu.iota {dimensions = array<i32: 0>} : vector<8x128xi32>
    %c32_i32_6 = arith.constant 32 : i32
    %32 = vector.broadcast %c32_i32_6 : i32 to vector<8x128xi32>
    %33 = arith.muli %31, %32 : vector<8x128xi32>
    %34 = arith.cmpi sge, %30, %33 : vector<8x128xi32>
    %c1_i32_7 = arith.constant 1 : i32
    %35 = vector.broadcast %c1_i32_7 : i32 to vector<8x128xi32>
    %36 = arith.addi %31, %35 : vector<8x128xi32>
    %c32_i32_8 = arith.constant 32 : i32
    %37 = vector.broadcast %c32_i32_8 : i32 to vector<8x128xi32>
    %38 = arith.muli %36, %37 : vector<8x128xi32>
    %39 = arith.cmpi slt, %30, %38 : vector<8x128xi32>
    %40 = arith.andi %34, %39 : vector<8x128xi1>
    %41 = arith.extui %40 : vector<8x128xi1> to vector<8x128xi32>
    %42 = arith.sitofp %41 : vector<8x128xi32> to vector<8x128xf32>
    %cst = arith.constant dense<0.000000e+00> : vector<4x8xf32>
    %43 = tpu.matmul %9, %29, %cst {dimension_numbers = #tpu.dot_dimension_numbers<[1], [0], [0], [1], [0, 0, 1, 1], [], []>, precision = #tpu.contract_precision<fp32>} : vector<4x128xf32>, vector<128x8xf32>, vector<4x8xf32> -> vector<4x8xf32>
    %cst_9 = arith.constant dense<0.000000e+00> : vector<4x128xf32>
    %44 = tpu.matmul %43, %42, %cst_9 {dimension_numbers = #tpu.dot_dimension_numbers<[1], [0], [0], [1], [0, 0, 1, 1], [], []>, precision = #tpu.contract_precision<fp32>} : vector<4x8xf32>, vector<8x128xf32>, vector<4x128xf32> -> vector<4x128xf32>
    %cst_10 = arith.constant dense<0.000000e+00> : vector<4x8xf32>
    %45 = tpu.matmul %16, %29, %cst_10 {dimension_numbers = #tpu.dot_dimension_numbers<[1], [0], [0], [1], [0, 0, 1, 1], [], []>, precision = #tpu.contract_precision<fp32>} : vector<4x128xf32>, vector<128x8xf32>, vector<4x8xf32> -> vector<4x8xf32>
    %cst_11 = arith.constant dense<0.000000e+00> : vector<4x128xf32>
    %46 = tpu.matmul %45, %42, %cst_11 {dimension_numbers = #tpu.dot_dimension_numbers<[1], [0], [0], [1], [0, 0, 1, 1], [], []>, precision = #tpu.contract_precision<fp32>} : vector<4x8xf32>, vector<8x128xf32>, vector<4x128xf32> -> vector<4x128xf32>
    %c0_12 = arith.constant 0 : index
    %47 = memref.load %arg4[%c0_12] : memref<2xf32, #tpu.memory_space<smem>>
    %48 = vector.broadcast %47 : f32 to vector<4x128xf32>
    %49 = arith.addf %44, %48 : vector<4x128xf32>
    %50 = arith.negf %49 : vector<4x128xf32>
    %51 = math.exp %50 : vector<4x128xf32>
    %cst_13 = arith.constant 1.000000e+00 : f32
    %52 = vector.broadcast %cst_13 : f32 to vector<4x128xf32>
    %53 = arith.addf %52, %51 : vector<4x128xf32>
    %54 = arith.divf %52, %53 : vector<4x128xf32>
    %c1 = arith.constant 1 : index
    %55 = memref.load %arg4[%c1] : memref<2xf32, #tpu.memory_space<smem>>
    %56 = vector.broadcast %55 : f32 to vector<4x128xf32>
    %57 = arith.addf %46, %56 : vector<4x128xf32>
    %58 = arith.negf %57 : vector<4x128xf32>
    %59 = math.exp %58 : vector<4x128xf32>
    %cst_14 = arith.constant 1.000000e+00 : f32
    %60 = vector.broadcast %cst_14 : f32 to vector<4x128xf32>
    %61 = arith.addf %60, %59 : vector<4x128xf32>
    %62 = arith.divf %60, %61 : vector<4x128xf32>
    %63 = arith.mulf %54, %0 : vector<4x128xf32>
    %64 = arith.mulf %62, %1 : vector<4x128xf32>
    %65 = arith.addf %63, %64 : vector<4x128xf32>
    %c0_15 = arith.constant 0 : index
    %c0_16 = arith.constant 0 : index
    %66 = vector.load %arg5[%c0_15, %c0_16] : memref<4x128xf32, #tpu.memory_space<vmem>>, vector<4x128xf32>
    tpu.vector_store %arg5[%c0_15, %c0_16], %65 {strides = array<i32>} : memref<4x128xf32, #tpu.memory_space<vmem>>, vector<4x128xf32>,
    return
  }
  func.func @transform_0(%arg0: i32) -> (i32, i32) {
    %c0_i32 = arith.constant 0 : i32
    %c0_i32_0 = arith.constant 0 : i32
    return %arg0, %c0_i32 : i32, i32
  }
  func.func @transform_1(%arg0: i32) -> (i32, i32) {
    %c0_i32 = arith.constant 0 : i32
    %c0_i32_0 = arith.constant 0 : i32
    return %arg0, %c0_i32 : i32, i32
  }
  func.func @transform_2(%arg0: i32) -> (i32, i32) {
    %c0_i32 = arith.constant 0 : i32
    %c0_i32_0 = arith.constant 0 : i32
    %c0_i32_1 = arith.constant 0 : i32
    return %c0_i32, %c0_i32_0 : i32, i32
  }
  func.func @transform_3(%arg0: i32) -> i32 {
    %c0_i32 = arith.constant 0 : i32
    %c0_i32_0 = arith.constant 0 : i32
    return %c0_i32 : i32
  }
  func.func @transform_4(%arg0: i32) -> (i32, i32) {
    %c0_i32 = arith.constant 0 : i32
    %c0_i32_0 = arith.constant 0 : i32
    return %arg0, %c0_i32 : i32, i32
  }
}

</mosaic_0001>

<bundles_post_ra>
// kernel: tpu_custom_call.1
= control target key start
LH: loop header
LB: loop body
LE: loop exit
PB: predicated region body
PF: predicated region fallthrough
CT: control target
= control target key end

     0   :  { %9 = vsyncpa [#allocation3], 0  ;;  %s4531_s0 = inlined_call_operand.hbm [shape: f32[4,128], index: 0, kind: input, shape index: {}]   ;;  %s4532_s1 = inlined_call_operand.hbm [shape: f32[4,128], index: 1, kind: input, shape index: {}]   ;;  %s4533_s2 = inlined_call_operand.hbm [shape: f32[4,128], index: 2, kind: input, shape index: {}]   ;;  %s4534_s3 = inlined_call_operand.vmem [shape: f32[2], index: 3, kind: input, shape index: {}]   ;;  %s4535_s4 = inlined_call_operand.hbm [shape: f32[4,128], index: 4, kind: output, shape index: {}]  }
   0x1   :  { %10 = vsyncpa [#allocation7], 0 }
   0x2   :  { %11 = vsyncpa [#allocation5], 0 }
   0x3   :  { %12 = vsyncpa [#allocation4], 0  ;;  %s3367_s15 = smov [#allocation6]   ;;  %s3368_s17 = smov [#allocation2]  }
   0x4   :  { %s29_s16 = sshll.u32 %s3367_s15, 4  ;;  %s19_s18 = sshll.u32 %s3368_s17, 4  ;;  %s30_s16 = int_to_ptr.vmem [resolvable:$true] %s29_s16  ;;  %s20_s18 = int_to_ptr.vmem [resolvable:$true] %s19_s18 }
   0x5   :  { %s3275_s19 = scalar_lea.vmem %s30_s16, 64  ;;  %p3280_p1 = scmp.lt.s32.totalorder %s30_s16, %s30_s16 }
   0x6   :  { %p3276_p0 = scmp.ne.s32.totalorder %s30_s16, %s3275_s19  ;;  %p3281_p2 = scmp.lt.s32.totalorder %s3275_s19, %s3275_s19 }
   0x8   :  { %p3282_p3 = por %p3281_p2, %p3280_p1 }
   0xa   :  { %p3283_p4 = pnand %p3282_p3, %p3276_p0 }
   0xc   :  { %3286 = shalt.err (!%p3283_p4)
}
   0xd   :  { %32 = dma.hbm_to_vmem [thread:$0]  %s4532_s1, 64, %s30_s16, [#allocation7]  }
   0xe   :  { %s3295_s22 = scalar_lea.vmem %s20_s18, 64  ;;  %p3300_p6 = scmp.lt.s32.totalorder %s20_s18, %s20_s18 }
   0xf   :  { %p3296_p5 = scmp.ne.s32.totalorder %s20_s18, %s3295_s22  ;;  %p3301_p7 = scmp.lt.s32.totalorder %s3295_s22, %s3295_s22 }
  0x11   :  { %p3302_p8 = por %p3301_p7, %p3300_p6 }
  0x13   :  { %p3303_p9 = pnand %p3302_p8, %p3296_p5 }
  0x15   :  { %3306 = shalt.err (!%p3303_p9)
}
  0x16   :  { %22 = dma.hbm_to_vmem [thread:$0]  %s4531_s0, 64, %s20_s18, [#allocation3]  }
  0x17   :  { %s49_s27 = sshll.u32 %s4534_s3, 4  ;;  %s3369_s28 = smov [#allocation8]   ;;  %s50_s27 = int_to_ptr.vmem [resolvable:$true] %s49_s27 }
  0x18   :  { %s39_s29 = sshll.u32 %s3369_s28, 4  ;;  %s40_s29 = int_to_ptr.vmem [resolvable:$true] %s39_s29 }
  0x19   :  { %s3315_s1 = scalar_lea.vmem %s40_s29, 64  ;;  %p3320_p11 = scmp.lt.s32.totalorder %s40_s29, %s40_s29 }
  0x1a   :  { %p3316_p10 = scmp.ne.s32.totalorder %s40_s29, %s3315_s1  ;;  %p3321_p12 = scmp.lt.s32.totalorder %s3315_s1, %s3315_s1 }
  0x1c   :  { %p3322_p13 = por %p3321_p12, %p3320_p11 }
  0x1e   :  { %p3323_p0 = pnand %p3322_p13, %p3316_p10 }
  0x20   :  { %3326 = shalt.err (!%p3323_p0)
}
  0x21   :  { %42 = dma.hbm_to_vmem [thread:$0]  %s4533_s2, 64, %s40_s29, [#allocation7]  }
  0x22   :  { %s3327_s0 = scalar_lea.vmem %s50_s27, 16  ;;  %p3332_p2 = scmp.lt.s32.totalorder %s50_s27, %s50_s27 }
  0x23   :  { %p3328_p1 = scmp.ne.s32.totalorder %s50_s27, %s3327_s0  ;;  %p3333_p3 = scmp.lt.s32.totalorder %s3327_s0, %s3327_s0 }
  0x25   :  { %p3334_p4 = por %p3333_p3, %p3332_p2 }
  0x27   :  { %p3335_p5 = pnand %p3334_p4, %p3328_p1 }
  0x29   :  { %3338 = shalt.err (!%p3335_p5)
}
  0x2a   :  { %s3370_s3 = smov [#allocation9]  }
  0x2b   :  { %52 = dma.vmem_to_smem %s50_s27, 16, %s3370_s3, [#allocation5]  }
  0x2c   :  { %3359 = dma.done.wait [#allocation3], 64  }
  0x2d   :  { %3360 = vsyncadd [#allocation3], 4294967232 }
  0x2e   :  { %3361 = dma.done.wait [#allocation7], 128  }
  0x2f   :  { %3362 = vsyncadd [#allocation7], 4294967168 }
  0x30   :  { %3363 = dma.done.wait [#allocation5], 16  }
  0x31   :  { %3364 = vsyncadd [#allocation5], 4294967280 }
  0x32   :  { %65 = sfence }
  0x33   :  { %v69_v0 = vlaneseq  ;;  %v3371_v1 = vmov 0.0   ;;  %vm4536_vm0 = vmmov 0   ;;  %v4566_v14 = vmov 0  ;;  %s1483_s2 = sld [smem:[#allocation9]]  ;;  %s3374_s7 = smov [#allocation10]  }
  0x34   :  { %2769 = vmatprep.subr.mxu0 %v3371_v1  ;;  %2804 = vmatprep.subr.mxu1 %v3371_v1  ;;  %v4542_v15 = vmov 1.0   ;;  %v4572_v26 = vmov 0  ;;  %v4576_v33 = vmov 0  ;;  %v4582_v49 = vmov 0  ;;  %s2536_s6 = sld [smem:[#allocation9 + $0x1]]  ;;  %s2408_s8 = sshll.u32 %s3374_s7, 4  ;;  %s2409_s8 = int_to_ptr.vmem [resolvable:$true] %s2408_s8 }
  0x35   :  { %v3414_v2 = vshrl.u32 %v69_v0, 7  ;;  %v3416_v3 = vand.u32 127, %v69_v0  ;;  %2801 = vmatprep.mubr.msk.f32.mxu0 %vm4536_vm0, %v3371_v1  ;;  %2836 = vmatprep.mubr.msk.f32.mxu1 %vm4536_vm0, %v3371_v1  ;;  %v4585_v52 = vmov 0  ;;  %s3339_s9 = scalar_lea.vmem %s2409_s8, 64  ;;  %p3344_p7 = scmp.lt.s32.totalorder %s2409_s8, %s2409_s8 }
  0x36   :  { %p3340_p6 = scmp.ne.s32.totalorder %s2409_s8, %s3339_s9  ;;  %p3345_p8 = scmp.lt.s32.totalorder %s3339_s9, %s3339_s9 }
  0x37   :  { %4565 = vst [vmem:[#allocation15_spill] sm:$0xff] %v3416_v3  ;;  %v107_v4 = vadd.s32 120, %v3414_v2  ;;  %v3424_v5 = vmul.u32 32, %v3416_v3  ;;  %v127_v6 = vadd.s32 1, %v3416_v3  ;;  %v106_v7 = vadd.s32 112, %v3414_v2 }
  0x38   :  { %v105_v8 = vadd.s32 104, %v3414_v2  ;;  %v104_v9 = vadd.s32 96, %v3414_v2  ;;  %v103_v10 = vadd.s32 88, %v3414_v2  ;;  %v102_v11 = vadd.s32 80, %v3414_v2  ;;  %p3346_p9 = por %p3345_p8, %p3344_p7 }
  0x39   :  { %vm126_vm1 = vcmp.ge.s32.totalorder %v107_v4, %v3424_v5  ;;  %v3433_v12 = vmul.u32 32, %v127_v6  ;;  %vm125_vm2 = vcmp.ge.s32.totalorder %v106_v7, %v3424_v5  ;;  %v101_v13 = vadd.s32 72, %v3414_v2 }
  0x3a   :  { %vm124_vm3 = vcmp.ge.s32.totalorder %v105_v8, %v3424_v5  ;;  %vm123_vm4 = vcmp.ge.s32.totalorder %v104_v9, %v3424_v5  ;;  %vm122_vm5 = vcmp.ge.s32.totalorder %v103_v10, %v3424_v5  ;;  %vm121_vm6 = vcmp.ge.s32.totalorder %v102_v11, %v3424_v5  ;;  %p3347_p10 = pnand %p3346_p9, %p3340_p6 }
  0x3b   :  { %vm144_vm7 = vcmp.lt.s32.totalorder %v107_v4, %v3433_v12  ;;  %vm143_vm8 = vcmp.lt.s32.totalorder %v106_v7, %v3433_v12  ;;  %vm142_vm9 = vcmp.lt.s32.totalorder %v105_v8, %v3433_v12  ;;  %vm141_vm10 = vcmp.lt.s32.totalorder %v104_v9, %v3433_v12 }
  0x3c   :  { %vm3445_vm11 = vmand %vm126_vm1, %vm144_vm7  ;;  %vm140_vm12 = vcmp.lt.s32.totalorder %v103_v10, %v3433_v12  ;;  %vm139_vm13 = vcmp.lt.s32.totalorder %v102_v11, %v3433_v12  ;;  %vm120_vm14 = vcmp.ge.s32.totalorder %v101_v13, %v3424_v5  ;;  %vm138_vm15 = vcmp.lt.s32.totalorder %v101_v13, %v3433_v12 }
  0x3d   :  { %v4567_v14 = vsel %vm3445_vm11, 4294967295, %v4566_v14  ;;  %2770 = vmatpush3.msk.msra.mxu0 %vm3445_vm11, %v4542_v15  ;;  %vm3458_vm0 = vmand %vm125_vm2, %vm143_vm8  ;;  %v2434_v17 = vsel %vm3445_vm11, 1.0, %v3371_v1  ;;  %v100_v18 = vadd.s32 64, %v3414_v2  ;;  %v99_v19 = vadd.s32 56, %v3414_v2 }
  0x3e   :  { %v3468_v20 = vadd.s32 48, %v3414_v2  ;;  %2771 = vmatprep.subr.mxu0 %v3371_v1  ;;  %vm3475_vm1 = vmand %vm124_vm3, %vm142_vm9  ;;  %v3479_v22 = vsub.f32 %v2434_v17, %v2434_v17  ;;  %v2433_v23 = vsel %vm3458_vm0, 1.0, %v3371_v1  ;;  %v3485_v24 = vadd.s32 40, %v3414_v2 }
  0x3f   :  { %v3488_v25 = vadd.s32 32, %v3414_v2  ;;  %2772 = vmatpush3.msk.msra.mxu0 %vm3458_vm0, %v4542_v15  ;;  %vm3497_vm2 = vmand %vm123_vm4, %vm141_vm10  ;;  %v3501_v27 = vsub.f32 %v2433_v23, %v2433_v23  ;;  %v2432_v28 = vsel %vm3475_vm1, 1.0, %v3371_v1  ;;  %vm119_vm3 = vcmp.ge.s32.totalorder %v100_v18, %v3424_v5 }
  0x40   :  { %v4573_v26 = vsel %vm3497_vm2, 4294967295, %v4572_v26  ;;  %vm137_vm7 = vcmp.lt.s32.totalorder %v100_v18, %v3433_v12  ;;  %2773 = vmatprep.subr.mxu0 %v3371_v1  ;;  %vm3513_vm4 = vmand %vm122_vm5, %vm140_vm12  ;;  %v3518_v30 = vand.u32 4294901760, %v3479_v22  ;;  %v3520_v31 = vsub.f32 %v2432_v28, %v2432_v28 }
  0x41   :  { %v2431_v32 = vsel %vm3497_vm2, 1.0, %v3371_v1  ;;  %vm118_vm8 = vcmp.ge.s32.totalorder %v99_v19, %v3424_v5  ;;  %2774 = vmatpush3.msk.msra.mxu0 %vm3475_vm1, %v4542_v15  ;;  %vm3533_vm5 = vmand %vm121_vm6, %vm139_vm13  ;;  %v3538_v34 = vand.u32 4294901760, %v3501_v27  ;;  %vm136_vm9 = vcmp.lt.s32.totalorder %v99_v19, %v3433_v12 }
  0x42   :  { %v4577_v33 = vsel %vm3533_vm5, 4294967295, %v4576_v33  ;;  %v3540_v35 = vsub.f32 %v2431_v32, %v2431_v32  ;;  %v2430_v36 = vsel %vm3513_vm4, 1.0, %v3371_v1  ;;  %2775 = vmatprep.subr.mxu0 %v3371_v1  ;;  %v296_v37 = vsub.f32 %v3479_v22, %v3518_v30  ;;  %vm3565_vm10 = vmand %vm120_vm14, %vm138_vm15 }
  0x43   :  { %v3550_v38 = vand.u32 4294901760, %v3520_v31  ;;  %v3552_v39 = vsub.f32 %v2430_v36, %v2430_v36  ;;  %vm117_vm6 = vcmp.ge.s32.totalorder %v3468_v20, %v3424_v5  ;;  %2776 = vmatpush3.msk.msra.mxu0 %vm3497_vm2, %v4542_v15  ;;  %v303_v40 = vsub.f32 %v3501_v27, %v3538_v34  ;;  %vm3596_vm13 = vmand %vm119_vm3, %vm137_vm7 }
  0x44   :  { %v3570_v42 = vand.u32 4294901760, %v3540_v35  ;;  %vm135_vm12 = vcmp.lt.s32.totalorder %v3468_v20, %v3433_v12  ;;  %v2429_v43 = vsel %vm3533_vm5, 1.0, %v3371_v1  ;;  %2777 = vmatprep.subr.mxu0 %v3371_v1  ;;  %v3578_v44 = vand.u32 4294901760, %v296_v37  ;;  %vm3614_vm3 = vmand %vm118_vm8, %vm136_vm9 }
  0x45   :  { %v310_v45 = vsub.f32 %v3520_v31, %v3550_v38  ;;  %v3583_v46 = vand.u32 4294901760, %v3552_v39  ;;  %v3585_v47 = vsub.f32 %v2429_v43, %v2429_v43  ;;  %2778 = vmatpush3.msk.msra.mxu0 %vm3513_vm4, %v4542_v15  ;;  %v3590_v48 = vand.u32 4294901760, %v303_v40  ;;  %vm3648_vm9 = vmand %vm117_vm6, %vm135_vm12 }
  0x46   :  { %4580 = vst [vmem:[#allocation16_spill] sm:$0xff] %v3578_v44  ;;  %v4583_v49 = vsel %vm3596_vm13, 4294967295, %v4582_v49  ;;  %v317_v50 = vsub.f32 %v3540_v35, %v3570_v42  ;;  %vm116_vm14 = vcmp.ge.s32.totalorder %v3485_v24, %v3424_v5  ;;  %vm134_vm15 = vcmp.lt.s32.totalorder %v3485_v24, %v3433_v12  ;;  %2779 = vmatprep.subr.mxu0 %v3371_v1 }
  0x47   :  { %4581 = vst [vmem:[#allocation17_spill] sm:$0xff] %v3590_v48  ;;  %2805 = vmatpush3.msra.mxu1 %v3578_v44  ;;  %v3608_v51 = vand.u32 4294901760, %v310_v45  ;;  %v4586_v52 = vsel %vm3614_vm3, 4294967295, %v4585_v52  ;;  %v324_v53 = vsub.f32 %v3552_v39, %v3583_v46  ;;  %v3621_v54 = vand.u32 4294901760, %v3585_v47  ;;  %2780 = vmatpush3.msk.msra.mxu0 %vm3533_vm5, %v4542_v15  ;;  %vm3668_vm6 = vmand %vm116_vm14, %vm134_vm15 }
  0x48   :  { %v2428_v55 = vsel %vm3565_vm10, 1.0, %v3371_v1  ;;  %2806 = vmatprep.subr.mxu1 %v3371_v1  ;;  %v3630_v56 = vand.u32 4294901760, %v317_v50  ;;  %vm115_vm7 = vcmp.ge.s32.totalorder %v3488_v25, %v3424_v5  ;;  %vm133_vm8 = vcmp.lt.s32.totalorder %v3488_v25, %v3433_v12  ;;  %2781 = vmatprep.subr.mxu0 %v3371_v1 }
  0x49   :  { %4584 = vst [vmem:[#allocation18_spill] sm:$0xff] %v3608_v51  ;;  %v3632_v57 = vsub.f32 %v2428_v55, %v2428_v55  ;;  %2807 = vmatpush3.msra.mxu1 %v3590_v48  ;;  %v3640_v58 = vand.u32 4294901760, %v324_v53  ;;  %v331_v60 = vsub.f32 %v3585_v47, %v3621_v54  ;;  %v2427_v61 = vsel %vm3596_vm13, 1.0, %v3371_v1  ;;  %2782 = vmatpush3.msk.msra.mxu0 %vm3565_vm10, %v4542_v15  ;;  %vm3701_vm15 = vmand %vm115_vm7, %vm133_vm8  ;;  %v3773_v53 = vld [vmem:[#allocation8] sm:$0xf] }
  0x4a   :  { %4587 = vst [vmem:[#allocation19_spill] sm:$0xff] %v3630_v56  ;;  %v95_v62 = vadd.s32 24, %v3414_v2  ;;  %2808 = vmatprep.subr.mxu1 %v3371_v1  ;;  %v3675_v4 = vsub.f32 %v2427_v61, %v2427_v61  ;;  %v2426_v6 = vsel %vm3614_vm3, 1.0, %v3371_v1  ;;  %v94_v7 = vadd.s32 16, %v3414_v2  ;;  %2783 = vmatprep.subr.mxu0 %v3371_v1 }
  0x4b   :  { %4588 = vst [vmem:[#allocation20_spill] sm:$0xff] %v3640_v58  ;;  %v3673_v0 = vand.u32 4294901760, %v3632_v57  ;;  %2809 = vmatpush3.msra.mxu1 %v3608_v51  ;;  %v3683_v8 = vand.u32 4294901760, %v331_v60  ;;  %v3687_v9 = vsub.f32 %v2426_v6, %v2426_v6  ;;  %2784 = vmatpush3.msk.msra.mxu0 %vm3596_vm13, %v4542_v15  ;;  %v2425_v18 = vsel %vm3648_vm9, 1.0, %v3371_v1 }
  0x4c   :  { %2810 = vmatprep.subr.mxu1 %v3371_v1  ;;  %v3706_v13 = vand.u32 4294901760, %v3675_v4  ;;  %2785 = vmatprep.subr.mxu0 %v3371_v1  ;;  %v93_v19 = vadd.s32 8, %v3414_v2  ;;  %v2424_v20 = vsel %vm3668_vm6, 1.0, %v3371_v1  ;;  %v3730_v25 = vsub.f32 %v2425_v18, %v2425_v18 }
  0x4d   :  { %4593 = vst [vmem:[#allocation21_spill] sm:$0xff] %v3683_v8  ;;  %v338_v10 = vsub.f32 %v3632_v57, %v3673_v0  ;;  %2811 = vmatpush3.msra.mxu1 %v3630_v56  ;;  %v3713_v17 = vand.u32 4294901760, %v3687_v9  ;;  %2786 = vmatpush3.msk.msra.mxu0 %vm3614_vm3, %v4542_v15  ;;  %v3732_v28 = vsub.f32 %v2424_v20, %v2424_v20  ;;  %v2423_v37 = vsel %vm3701_vm15, 1.0, %v3371_v1 }
  0x4e   :  { %2812 = vmatprep.subr.mxu1 %v3371_v1  ;;  %v345_v24 = vsub.f32 %v3675_v4, %v3706_v13  ;;  %2787 = vmatprep.subr.mxu0 %v3371_v1  ;;  %vm4597_vm7 = vcmp.lt.s32.totalorder %v95_v62, %v3433_v12  ;;  %vm4598_vm8 = vcmp.ge.s32.totalorder %v95_v62, %v3424_v5  ;;  %v3766_v45 = vand.u32 4294901760, %v3730_v25 }
  0x4f   :  { %v3726_v23 = vand.u32 4294901760, %v338_v10  ;;  %2813 = vmatpush3.msra.mxu1 %v3640_v58  ;;  %vm3740_vm12 = vmand %vm4598_vm8, %vm4597_vm7  ;;  %v352_v36 = vsub.f32 %v3687_v9, %v3713_v17  ;;  %vm130_vm3 = vcmp.lt.s32.totalorder %v93_v19, %v3433_v12  ;;  %2788 = vmatpush3.msk.msra.mxu0 %vm3648_vm9, %v4542_v15  ;;  %vm4602_vm7 = vcmp.lt.s32.totalorder %v94_v7, %v3433_v12  ;;  %v3800_v10 = vld [vmem:[#allocation2] sm:$0xf] }
  0x50   :  { %2814 = vmatprep.subr.mxu1 %v3371_v1  ;;  %v3755_v40 = vand.u32 4294901760, %v345_v24  ;;  %vm4603_vm8 = vcmp.ge.s32.totalorder %v94_v7, %v3424_v5  ;;  %v3769_v50 = vand.u32 4294901760, %v3732_v28  ;;  %2789 = vmatprep.subr.mxu0 %v3371_v1  ;;  %v3781_v60 = vsub.f32 %v2423_v37, %v2423_v37  ;;  %v3818_v24 = vld [vmem:[#allocation6] sm:$0xf] }
  0x51   :  { %4596 = vst [vmem:[#allocation22_spill] sm:$0xff] %v3726_v23  ;;  %vm3761_vm13 = vmand %vm4603_vm8, %vm4602_vm7  ;;  %2815 = vmatpush3.msra.mxu1 %v3683_v8  ;;  %v3777_v55 = vand.u32 4294901760, %v352_v36  ;;  %vm129_vm7 = vcmp.lt.s32.totalorder %v3414_v2, %v3433_v12  ;;  %v71_v61 = vsub.s32 0, %v3414_v2  ;;  %2790 = vmatpush3.msk.msra.mxu0 %vm3668_vm6, %v4542_v15  ;;  %v359_v62 = vsub.f32 %v3730_v25, %v3766_v45 }
  0x52   :  { %4601 = vst [vmem:[#allocation23_spill] sm:$0xff] %v3755_v40  ;;  %2816 = vmatprep.subr.mxu1 %v3371_v1  ;;  %vm4607_vm8 = vcmp.ge.s32.totalorder %v93_v19, %v3424_v5  ;;  %v4608_v6 = vmov 0  ;;  %v366_v7 = vsub.f32 %v3732_v28, %v3769_v50  ;;  %v76_v18 = vsub.s32 1, %v3414_v2  ;;  %2791 = vmatprep.subr.mxu0 %v3371_v1  ;;  %4613 = vst [vmem:[#allocation25_spill] sm:$0xff] %v3818_v24 }
  0x53   :  { %4606 = vst [vmem:[#allocation24_spill] sm:$0xff] %v3777_v55  ;;  %vm3794_vm14 = vmand %vm4607_vm8, %vm130_vm3  ;;  %v2422_v20 = vsel %vm3740_vm12, 1.0, %v3371_v1  ;;  %2817 = vmatpush3.msra.mxu1 %v3726_v23  ;;  %vm4610_vm3 = vcmp.ge.s32.totalorder %v3414_v2, %v3424_v5  ;;  %v3816_v19 = vand.u32 4294901760, %v3781_v60  ;;  %v72_v36 = vrot.slane %v3773_v53, %v71_v61 }
  0x54   :  { %v4609_v6 = vsel %vm3794_vm14, 4294967295, %v4608_v6  ;;  %vm3811_vm8 = vmand %vm4610_vm3, %vm129_vm7  ;;  %v3821_v37 = vsub.f32 %v2422_v20, %v2422_v20  ;;  %v2421_v15 = vsel %vm3761_vm13, 1.0, %v3371_v1  ;;  %v4614_v3 = vmov 1.0   ;;  %2818 = vmatprep.subr.mxu1 %v3371_v1 }
  0x55   :  { %2792 = vmatpush3.msk.msra.mxu0 %vm3701_vm15, %v4614_v3  ;;  %v3830_v5 = vand.u32 4294901760, %v359_v62  ;;  %v77_v23 = vrot.slane %v3773_v53, %v76_v18  ;;  %v3833_v8 = vsub.f32 %v2421_v15, %v2421_v15  ;;  %2819 = vmatpush3.msra.mxu1 %v3755_v40  ;;  %v373_v61 = vsub.f32 %v3781_v60, %v3816_v19 }
  0x56   :  { %2793 = vmatprep.subr.mxu0 %v3371_v1  ;;  %v73_v20 = vmul.f32 %v72_v36, %v3800_v10  ;;  %v3841_v58 = vand.u32 4294901760, %v3821_v37  ;;  %v2420_v62 = vsel %vm3794_vm14, 1.0, %v3371_v1  ;;  %2820 = vmatprep.subr.mxu1 %v3371_v1  ;;  %v2419_v36 = vsel %vm3811_vm8, 1.0, %v3371_v1 }
  0x57   :  { %4615 = vst [vmem:[#allocation26_spill] sm:$0xff] %v3830_v5  ;;  %2794 = vmatpush3.msk.msra.mxu0 %vm3740_vm12, %v4614_v3  ;;  %v78_v15 = vmul.f32 %v77_v23, %v3818_v24  ;;  %v3852_v18 = vand.u32 4294901760, %v3833_v8  ;;  %v3854_v40 = vsub.f32 %v2420_v62, %v2420_v62  ;;  %2821 = vmatpush3.msra.mxu1 %v3777_v55  ;;  %v3861_v56 = vand.u32 4294901760, %v366_v7 }
  0x58   :  { %2795 = vmatprep.subr.mxu0 %v3371_v1  ;;  %v380_v51 = vsub.f32 %v3821_v37, %v3841_v58  ;;  %v3865_v48 = vsub.f32 %v2419_v36, %v2419_v36  ;;  %2822 = vmatprep.subr.mxu1 %v3371_v1  ;;  %v3876_v7 = vand.u32 4294901760, %v373_v61  ;;  %vm4618_vm7 = vnez %v4583_v49 }
  0x59   :  { %4616 = vst [vmem:[#allocation27_spill] sm:$0xff] %v3861_v56  ;;  %2796 = vmatpush3.msk.msra.mxu0 %vm3761_vm13, %v4614_v3  ;;  %v79_v23 = vadd.f32 %v78_v15, %v73_v20  ;;  %v3872_v62 = vand.u32 4294901760, %v3854_v40  ;;  %2823 = vmatpush3.msra.mxu1 %v3830_v5  ;;  %v387_v36 = vsub.f32 %v3833_v8, %v3852_v18  ;;  %vm4619_vm3 = vnez %v4586_v52 }
  0x5a   :  { %2797 = vmatprep.subr.mxu0 %v3371_v1  ;;  %4617 = vst [vmem:[#allocation28_spill] sm:$0xff] %v3876_v7  ;;  %v3881_v55 = vand.u32 4294901760, %v3865_v48  ;;  %2824 = vmatprep.subr.mxu1 %v3371_v1  ;;  %v3891_v61 = vand.u32 4294901760, %v380_v51 }
  0x5b   :  { %2798 = vmatpush3.msk.msra.mxu0 %vm3794_vm14, %v4614_v3  ;;  %v3887_v20 = vand.u32 4294901760, %v79_v23  ;;  %2825 = vmatpush3.msra.mxu1 %v3861_v56  ;;  %v394_v15 = vsub.f32 %v3854_v40, %v3872_v62  ;;  %v3904_v44 = vand.u32 4294901760, %v387_v36 }
  0x5c   :  { %2799 = vmatprep.subr.mxu0 %v3371_v1  ;;  %2826 = vmatprep.subr.mxu1 %v3371_v1  ;;  %v401_v51 = vsub.f32 %v3865_v48, %v3881_v55 }
  0x5d   :  { %2800 = vmatpush3.msk.msra.mxu0 %vm3811_vm8, %v4614_v3  ;;  %v3900_v5 = vsub.f32 %v79_v23, %v3887_v20  ;;  %2827 = vmatpush3.msra.mxu1 %v3876_v7  ;;  %v3911_v24 = vand.u32 4294901760, %v394_v15 }
  0x5e   :  { %2839 = vmatprep.subr.mxu0 %v3371_v1  ;;  %2828 = vmatprep.subr.mxu1 %v3371_v1  ;;  %v3918_v36 = vand.u32 4294901760, %v401_v51  ;;  %v4622_v51 = vld [vmem:[#allocation25_spill] sm:$0xff] }
  0x5f   :  { %v284_v56 = vand.u32 4294901760, %v3900_v5  ;;  %2829 = vmatpush3.msra.mxu1 %v3891_v61 }
  0x60   :  { %2830 = vmatprep.subr.mxu1 %v3371_v1 }
  0x61   :  { %v285_v23 = vsub.f32 %v3900_v5, %v284_v56  ;;  %2831 = vmatpush3.msra.mxu1 %v3904_v44 }
  0x62   :  { %2832 = vmatprep.subr.mxu1 %v3371_v1 }
  0x63   :  { %v286_v7 = vand.u32 4294901760, %v285_v23  ;;  %2833 = vmatpush3.msra.mxu1 %v3911_v24 }
  0x64   :  { %2834 = vmatprep.subr.mxu1 %v3371_v1 }
  0x65   :  { %2802 = vmatmul.mubr.f32.vlgmr.msra.gmra.mxu0 %v286_v7  ;;  %2835 = vmatpush3.msra.mxu1 %v3918_v36 }
  0x66   :  { %2840 = vmatpush3.msra.mxu0 %v3479_v22  ;;  %2837 = vmatmul.mubr.f32.vlgmr.msra.gmra.mxu1 %v3887_v20 }
  0x67   :  { %2841 = vmatprep.subr.mxu0 %v3371_v1  ;;  %2874 = vmatprep.subr.mxu1 %v3371_v1 }
  0x68   :  { %2842 = vmatpush3.msra.mxu0 %v3501_v27  ;;  %2875 = vmatpush3.msk.msra.mxu1 %vm3445_vm11, %v4614_v3 }
  0x69   :  { %2843 = vmatprep.subr.mxu0 %v3371_v1  ;;  %2876 = vmatprep.subr.mxu1 %v3371_v1 }
  0x6a   :  { %2844 = vmatpush3.msra.mxu0 %v3520_v31  ;;  %2877 = vmatpush3.msk.msra.mxu1 %vm3458_vm0, %v4614_v3 }
  0x6b   :  { %2845 = vmatprep.subr.mxu0 %v3371_v1  ;;  %2878 = vmatprep.subr.mxu1 %v3371_v1 }
  0x6c   :  { %2846 = vmatpush3.msra.mxu0 %v3540_v35  ;;  %2879 = vmatpush3.msk.msra.mxu1 %vm3475_vm1, %v4614_v3 }
  0x6d   :  { %2847 = vmatprep.subr.mxu0 %v3371_v1  ;;  %2880 = vmatprep.subr.mxu1 %v3371_v1 }
  0x6e   :  { %2848 = vmatpush3.msra.mxu0 %v3552_v39  ;;  %2881 = vmatpush3.msk.msra.mxu1 %vm3497_vm2, %v4614_v3 }
  0x6f   :  { %2849 = vmatprep.subr.mxu0 %v3371_v1  ;;  %2882 = vmatprep.subr.mxu1 %v3371_v1 }
  0x70   :  { %2850 = vmatpush3.msra.mxu0 %v3585_v47  ;;  %2883 = vmatpush3.msk.msra.mxu1 %vm3513_vm4, %v4614_v3 }
  0x71   :  { %2851 = vmatprep.subr.mxu0 %v3371_v1  ;;  %2884 = vmatprep.subr.mxu1 %v3371_v1 }
  0x72   :  { %2852 = vmatpush3.msra.mxu0 %v3632_v57  ;;  %2885 = vmatpush3.msk.msra.mxu1 %vm3533_vm5, %v4614_v3 }
  0x73   :  { %2853 = vmatprep.subr.mxu0 %v3371_v1  ;;  %2886 = vmatprep.subr.mxu1 %v3371_v1 }
  0x74   :  { %2854 = vmatpush3.msra.mxu0 %v3675_v4  ;;  %2887 = vmatpush3.msk.msra.mxu1 %vm3565_vm10, %v4614_v3 }
  0x75   :  { %2855 = vmatprep.subr.mxu0 %v3371_v1  ;;  %2888 = vmatprep.subr.mxu1 %v3371_v1 }
  0x76   :  { %2856 = vmatpush3.msra.mxu0 %v3687_v9  ;;  %2889 = vmatpush3.msk.msra.mxu1 %vm4618_vm7, %v4614_v3 }
  0x77   :  { %2857 = vmatprep.subr.mxu0 %v3371_v1  ;;  %2890 = vmatprep.subr.mxu1 %v3371_v1 }
  0x78   :  { %2858 = vmatpush3.msra.mxu0 %v3730_v25  ;;  %2891 = vmatpush3.msk.msra.mxu1 %vm4619_vm3, %v4614_v3  ;;  %vm4620_vm3 = vmmov 0  }
  0x79   :  { %2859 = vmatprep.subr.mxu0 %v3371_v1  ;;  %2892 = vmatprep.subr.mxu1 %v3371_v1 }
  0x7a   :  { %2860 = vmatpush3.msra.mxu0 %v3732_v28  ;;  %2893 = vmatpush3.msk.msra.mxu1 %vm3648_vm9, %v4614_v3 }
  0x7b   :  { %2861 = vmatprep.subr.mxu0 %v3371_v1  ;;  %2894 = vmatprep.subr.mxu1 %v3371_v1 }
  0x7c   :  { %2862 = vmatpush3.msra.mxu0 %v3781_v60  ;;  %2895 = vmatpush3.msk.msra.mxu1 %vm3668_vm6, %v4614_v3 }
  0x7d   :  { %2863 = vmatprep.subr.mxu0 %v3371_v1  ;;  %2871 = vmatprep.mubr.msk.f32.mxu0 %vm4620_vm3, %v3371_v1 }
  0x7e   :  { %2864 = vmatpush3.msra.mxu0 %v3821_v37  ;;  %2896 = vmatprep.subr.mxu1 %v3371_v1 }
  0x7f   :  { %2865 = vmatprep.subr.mxu0 %v3371_v1  ;;  %2897 = vmatpush3.msk.msra.mxu1 %vm3701_vm15, %v4614_v3 }
  0x80   :  { %2866 = vmatpush3.msra.mxu0 %v3833_v8  ;;  %2898 = vmatprep.subr.mxu1 %v3371_v1 }
  0x81   :  { %2867 = vmatprep.subr.mxu0 %v3371_v1  ;;  %2899 = vmatpush3.msk.msra.mxu1 %vm3740_vm12, %v4614_v3 }
  0x82   :  { %2868 = vmatpush3.msra.mxu0 %v3854_v40  ;;  %2900 = vmatprep.subr.mxu1 %v3371_v1 }
  0x83   :  { %2869 = vmatprep.subr.mxu0 %v3371_v1  ;;  %2901 = vmatpush3.msk.msra.mxu1 %vm3761_vm13, %v4614_v3 }
  0x84   :  { %2870 = vmatpush3.msra.mxu0 %v3865_v48  ;;  %2902 = vmatprep.subr.mxu1 %v3371_v1 }
  0x85   :  { %2872 = vmatmul.mubr.f32.vlgmr.msra.gmra.mxu0 %v3900_v5  ;;  %2909 = vmatprep.subr.mxu0 %v3371_v1  ;;  %v87_v5 = vsub.s32 3, %v3414_v2 }
  0x86   :  { %2910 = vmatpush3.msra.mxu0 %v3518_v30  ;;  %2903 = vmatpush3.msk.msra.mxu1 %vm3794_vm14, %v4614_v3 }
  0x87   :  { %2911 = vmatprep.subr.mxu0 %v3371_v1  ;;  %2904 = vmatprep.subr.mxu1 %v3371_v1  ;;  %v88_v15 = vrot.slane %v3773_v53, %v87_v5 }
  0x88   :  { %2912 = vmatpush3.msra.mxu0 %v3538_v34  ;;  %2905 = vmatpush3.msk.msra.mxu1 %vm3811_vm8, %v4614_v3 }
  0x89   :  { %2913 = vmatprep.subr.mxu0 %v3371_v1  ;;  %2906 = vmatprep.mubr.msk.f32.mxu1 %vm4620_vm3, %v3371_v1  ;;  %v89_v23 = vmul.f32 %v88_v15, %v4622_v51  ;;  %v4627_v15 = vld [vmem:[#allocation19_spill] sm:$0xff]  ;;  %v4628_v51 = vld [vmem:[#allocation20_spill] sm:$0xff] }
  0x8a   :  { %2914 = vmatpush3.msra.mxu0 %v3550_v38  ;;  %2907 = vmatmul.mubr.f32.vlgmr.msra.gmra.mxu1 %v284_v56  ;;  %v82_v56 = vsub.s32 2, %v3414_v2 }
  0x8b   :  { %2915 = vmatprep.subr.mxu0 %v3371_v1  ;;  %2944 = vmatprep.subr.mxu1 %v3371_v1 }
  0x8c   :  { %2916 = vmatpush3.msra.mxu0 %v3570_v42  ;;  %2945 = vmatpush3.msk.msra.mxu1 %vm3445_vm11, %v4614_v3  ;;  %v83_v7 = vrot.slane %v3773_v53, %v82_v56  ;;  %v4623_v56 = vld [vmem:[#allocation16_spill] sm:$0xff] }
  0x8d   :  { %2917 = vmatprep.subr.mxu0 %v3371_v1  ;;  %2946 = vmatprep.subr.mxu1 %v3371_v1 }
  0x8e   :  { %2918 = vmatpush3.msra.mxu0 %v3583_v46  ;;  %2947 = vmatpush3.msk.msra.mxu1 %vm3458_vm0, %v4614_v3  ;;  %v84_v53 = vmul.f32 %v83_v7, %v3800_v10  ;;  %v4626_v7 = vld [vmem:[#allocation18_spill] sm:$0xff] }
  0x8f   :  { %2919 = vmatprep.subr.mxu0 %v3371_v1  ;;  %2948 = vmatprep.subr.mxu1 %v3371_v1 }
  0x90   :  { %2920 = vmatpush3.msra.mxu0 %v3621_v54  ;;  %2949 = vmatpush3.msk.msra.mxu1 %vm3475_vm1, %v4614_v3  ;;  %v90_v10 = vadd.f32 %v89_v23, %v84_v53  ;;  %v4629_v23 = vld [vmem:[#allocation21_spill] sm:$0xff] }
  0x91   :  { %2921 = vmatprep.subr.mxu0 %v3371_v1  ;;  %2950 = vmatprep.subr.mxu1 %v3371_v1 }
  0x92   :  { %2922 = vmatpush3.msra.mxu0 %v3673_v0  ;;  %2951 = vmatpush3.msk.msra.mxu1 %vm3497_vm2, %v4614_v3  ;;  %v4168_v5 = vand.u32 4294901760, %v90_v10 }
  0x93   :  { %2923 = vmatprep.subr.mxu0 %v3371_v1  ;;  %2952 = vmatprep.subr.mxu1 %v3371_v1 }
  0x94   :  { %2924 = vmatpush3.msra.mxu0 %v3706_v13  ;;  %2953 = vmatpush3.msk.msra.mxu1 %vm3513_vm4, %v4614_v3  ;;  %v4183_v53 = vsub.f32 %v90_v10, %v4168_v5 }
  0x95   :  { %2925 = vmatprep.subr.mxu0 %v3371_v1  ;;  %2954 = vmatprep.subr.mxu1 %v3371_v1 }
  0x96   :  { %2926 = vmatpush3.msra.mxu0 %v3713_v17  ;;  %2955 = vmatpush3.msk.msra.mxu1 %vm3533_vm5, %v4614_v3  ;;  %vm4621_vm5 = vnez %v4586_v52  ;;  %v925_v10 = vand.u32 4294901760, %v4183_v53 }
  0x97   :  { %2927 = vmatprep.subr.mxu0 %v3371_v1  ;;  %2956 = vmatprep.subr.mxu1 %v3371_v1 }
  0x98   :  { %2928 = vmatpush3.msra.mxu0 %v3766_v45  ;;  %2957 = vmatpush3.msk.msra.mxu1 %vm3565_vm10, %v4614_v3 }
  0x99   :  { %2929 = vmatprep.subr.mxu0 %v3371_v1  ;;  %2958 = vmatprep.subr.mxu1 %v3371_v1 }
  0x9a   :  { %2930 = vmatpush3.msra.mxu0 %v3769_v50  ;;  %2959 = vmatpush3.msk.msra.mxu1 %vm4618_vm7, %v4614_v3 }
  0x9b   :  { %2931 = vmatprep.subr.mxu0 %v3371_v1  ;;  %2960 = vmatprep.subr.mxu1 %v3371_v1 }
  0x9c   :  { %2932 = vmatpush3.msra.mxu0 %v3816_v19  ;;  %2961 = vmatpush3.msk.msra.mxu1 %vm4621_vm5, %v4614_v3 }
  0x9d   :  { %2933 = vmatprep.subr.mxu0 %v3371_v1  ;;  %2962 = vmatprep.subr.mxu1 %v3371_v1 }
  0x9e   :  { %2934 = vmatpush3.msra.mxu0 %v3841_v58  ;;  %2963 = vmatpush3.msk.msra.mxu1 %vm3648_vm9, %v4614_v3 }
  0x9f   :  { %2935 = vmatprep.subr.mxu0 %v3371_v1  ;;  %2964 = vmatprep.subr.mxu1 %v3371_v1 }
  0xa0   :  { %2936 = vmatpush3.msra.mxu0 %v3852_v18  ;;  %2965 = vmatpush3.msk.msra.mxu1 %vm3668_vm6, %v4614_v3 }
  0xa1   :  { %2937 = vmatprep.subr.mxu0 %v3371_v1  ;;  %2941 = vmatprep.mubr.msk.f32.mxu0 %vm4620_vm3, %v3371_v1 }
  0xa2   :  { %2938 = vmatpush3.msra.mxu0 %v3872_v62  ;;  %2966 = vmatprep.subr.mxu1 %v3371_v1 }
  0xa3   :  { %2939 = vmatprep.subr.mxu0 %v3371_v1  ;;  %2967 = vmatpush3.msk.msra.mxu1 %vm3701_vm15, %v4614_v3 }
  0xa4   :  { %2940 = vmatpush3.msra.mxu0 %v3881_v55  ;;  %2968 = vmatprep.subr.mxu1 %v3371_v1 }
  0xa5   :  { %2942 = vmatmul.mubr.f32.vlgmr.msra.gmra.mxu0 %v3887_v20  ;;  %2979 = vmatprep.subr.mxu0 %v3371_v1 }
  0xa6   :  { %2980 = vmatpush3.msk.msra.mxu0 %vm3445_vm11, %v4614_v3  ;;  %2969 = vmatpush3.msk.msra.mxu1 %vm3740_vm12, %v4614_v3 }
  0xa7   :  { %2981 = vmatprep.subr.mxu0 %v3371_v1  ;;  %2970 = vmatprep.subr.mxu1 %v3371_v1 }
  0xa8   :  { %2982 = vmatpush3.msk.msra.mxu0 %vm3458_vm0, %v4614_v3  ;;  %2971 = vmatpush3.msk.msra.mxu1 %vm3761_vm13, %v4614_v3 }
  0xa9   :  { %2983 = vmatprep.subr.mxu0 %v3371_v1  ;;  %2972 = vmatprep.subr.mxu1 %v3371_v1 }
  0xaa   :  { %2984 = vmatpush3.msk.msra.mxu0 %vm3475_vm1, %v4614_v3  ;;  %2973 = vmatpush3.msk.msra.mxu1 %vm3794_vm14, %v4614_v3 }
  0xab   :  { %2985 = vmatprep.subr.mxu0 %v3371_v1  ;;  %2974 = vmatprep.subr.mxu1 %v3371_v1 }
  0xac   :  { %2986 = vmatpush3.msk.msra.mxu0 %vm3497_vm2, %v4614_v3  ;;  %2975 = vmatpush3.msk.msra.mxu1 %vm3811_vm8, %v4614_v3  ;;  %vm4624_vm2 = vnez %v4577_v33 }
  0xad   :  { %2976 = vmatprep.mubr.msk.f32.mxu1 %vm4620_vm3, %v3371_v1  ;;  %2987 = vmatprep.subr.mxu0 %v3371_v1 }
  0xae   :  { %2977 = vmatmul.mubr.f32.vlgmr.msra.gmra.mxu1 %v3887_v20  ;;  %2988 = vmatpush3.msk.msra.mxu0 %vm3513_vm4, %v4614_v3  ;;  %v4625_v20 = vld [vmem:[#allocation17_spill] sm:$0xff] }
  0xaf   :  { %3014 = vmatprep.subr.mxu1 %v3371_v1  ;;  %2989 = vmatprep.subr.mxu0 %v3371_v1 }
  0xb0   :  { %3015 = vmatpush3.msra.mxu1 %v4623_v56  ;;  %2990 = vmatpush3.msk.msra.mxu0 %vm4624_vm2, %v4614_v3  ;;  %v4630_v56 = vld [vmem:[#allocation22_spill] sm:$0xff] }
  0xb1   :  { %3016 = vmatprep.subr.mxu1 %v3371_v1  ;;  %2991 = vmatprep.subr.mxu0 %v3371_v1 }
  0xb2   :  { %3017 = vmatpush3.msra.mxu1 %v4625_v20  ;;  %2992 = vmatpush3.msk.msra.mxu0 %vm3565_vm10, %v4614_v3  ;;  %v4631_v20 = vld [vmem:[#allocation23_spill] sm:$0xff] }
  0xb3   :  { %3018 = vmatprep.subr.mxu1 %v3371_v1  ;;  %2993 = vmatprep.subr.mxu0 %v3371_v1 }
  0xb4   :  { %3019 = vmatpush3.msra.mxu1 %v4626_v7  ;;  %2994 = vmatpush3.msk.msra.mxu0 %vm4618_vm7, %v4614_v3  ;;  %v926_v7 = vsub.f32 %v4183_v53, %v925_v10 }
  0xb5   :  { %3020 = vmatprep.subr.mxu1 %v3371_v1  ;;  %2995 = vmatprep.subr.mxu0 %v3371_v1 }
  0xb6   :  { %3021 = vmatpush3.msra.mxu1 %v4627_v15  ;;  %2996 = vmatpush3.msk.msra.mxu0 %vm4621_vm5, %v4614_v3  ;;  %v4632_v15 = vld [vmem:[#allocation24_spill] sm:$0xff] }
  0xb7   :  { %3022 = vmatprep.subr.mxu1 %v3371_v1  ;;  %2997 = vmatprep.subr.mxu0 %v3371_v1 }
  0xb8   :  { %3023 = vmatpush3.msra.mxu1 %v4628_v51  ;;  %2998 = vmatpush3.msk.msra.mxu0 %vm3648_vm9, %v4614_v3  ;;  %v4633_v51 = vld [vmem:[#allocation26_spill] sm:$0xff] }
  0xb9   :  { %3024 = vmatprep.subr.mxu1 %v3371_v1  ;;  %2999 = vmatprep.subr.mxu0 %v3371_v1 }
  0xba   :  { %3025 = vmatpush3.msra.mxu1 %v4629_v23  ;;  %3000 = vmatpush3.msk.msra.mxu0 %vm3668_vm6, %v4614_v3  ;;  %v927_v23 = vand.u32 4294901760, %v926_v7 }
  0xbb   :  { %3026 = vmatprep.subr.mxu1 %v3371_v1  ;;  %3001 = vmatprep.subr.mxu0 %v3371_v1 }
  0xbc   :  { %3027 = vmatpush3.msra.mxu1 %v4630_v56  ;;  %3002 = vmatpush3.msk.msra.mxu0 %vm3701_vm15, %v4614_v3  ;;  %v4634_v56 = vld [vmem:[#allocation27_spill] sm:$0xff] }
  0xbd   :  { %3028 = vmatprep.subr.mxu1 %v3371_v1  ;;  %3003 = vmatprep.subr.mxu0 %v3371_v1 }
  0xbe   :  { %3029 = vmatpush3.msra.mxu1 %v4631_v20  ;;  %3004 = vmatpush3.msk.msra.mxu0 %vm3740_vm12, %v4614_v3  ;;  %v4635_v20 = vld [vmem:[#allocation28_spill] sm:$0xff] }
  0xbf   :  { %3030 = vmatprep.subr.mxu1 %v3371_v1  ;;  %3005 = vmatprep.subr.mxu0 %v3371_v1 }
  0xc0   :  { %3031 = vmatpush3.msra.mxu1 %v4632_v15  ;;  %3006 = vmatpush3.msk.msra.mxu0 %vm3761_vm13, %v4614_v3 }
  0xc1   :  { %3032 = vmatprep.subr.mxu1 %v3371_v1  ;;  %3007 = vmatprep.subr.mxu0 %v3371_v1 }
  0xc2   :  { %3033 = vmatpush3.msra.mxu1 %v4633_v51  ;;  %3008 = vmatpush3.msk.msra.mxu0 %vm3794_vm14, %v4614_v3 }
  0xc3   :  { %3034 = vmatprep.subr.mxu1 %v3371_v1  ;;  %3009 = vmatprep.subr.mxu0 %v3371_v1 }
  0xc4   :  { %3035 = vmatpush3.msra.mxu1 %v4634_v56  ;;  %3010 = vmatpush3.msk.msra.mxu0 %vm3811_vm8, %v4614_v3 }
  0xc5   :  { %3036 = vmatprep.subr.mxu1 %v3371_v1  ;;  %3011 = vmatprep.mubr.msk.f32.mxu0 %vm4620_vm3, %v3371_v1 }
  0xc6   :  { %3037 = vmatpush3.msra.mxu1 %v4635_v20  ;;  %3049 = vmatprep.subr.mxu0 %v3371_v1 }
  0xc7   :  { %3012 = vmatmul.mubr.f32.vlgmr.msra.gmra.mxu0 %v927_v23  ;;  %3038 = vmatprep.subr.mxu1 %v3371_v1  ;;  %v1484_v23 = vstv %s1483_s2 }
  0xc8   :  { %3050 = vmatpush3.msra.mxu0 %v3479_v22  ;;  %3039 = vmatpush3.msra.mxu1 %v3891_v61  ;;  %v195_v22 = vadd.s32 1, %v3414_v2 }
  0xc9   :  { %3051 = vmatprep.subr.mxu0 %v3371_v1  ;;  %3040 = vmatprep.subr.mxu1 %v3371_v1 }
  0xca   :  { %3052 = vmatpush3.msra.mxu0 %v3501_v27  ;;  %3041 = vmatpush3.msra.mxu1 %v3904_v44  ;;  %v196_v27 = vmul.u32 32, %v195_v22 }
  0xcb   :  { %3053 = vmatprep.subr.mxu0 %v3371_v1  ;;  %3042 = vmatprep.subr.mxu1 %v3371_v1 }
  0xcc   :  { %3054 = vmatpush3.msra.mxu0 %v3520_v31  ;;  %3043 = vmatpush3.msra.mxu1 %v3911_v24 }
  0xcd   :  { %3055 = vmatprep.subr.mxu0 %v3371_v1  ;;  %3044 = vmatprep.subr.mxu1 %v3371_v1 }
  0xce   :  { %3056 = vmatpush3.msra.mxu0 %v3540_v35  ;;  %3045 = vmatpush3.msra.mxu1 %v3918_v36 }
  0xcf   :  { %3046 = vmatprep.mubr.msk.f32.mxu1 %vm4620_vm3, %v3371_v1  ;;  %3057 = vmatprep.subr.mxu0 %v3371_v1 }
  0xd0   :  { %3047 = vmatmul.mubr.f32.vlgmr.msra.gmra.mxu1 %v4168_v5  ;;  %3058 = vmatpush3.msra.mxu0 %v3552_v39 }
  0xd1   :  { %3084 = vmatprep.subr.mxu1 %v3371_v1  ;;  %3059 = vmatprep.subr.mxu0 %v3371_v1 }
  0xd2   :  { %3085 = vmatpush3.msk.msra.mxu1 %vm3445_vm11, %v4614_v3  ;;  %3060 = vmatpush3.msra.mxu0 %v3585_v47  ;;  %vm4636_vm11 = vnez %v4573_v26 }
  0xd3   :  { %3086 = vmatprep.subr.mxu1 %v3371_v1  ;;  %3061 = vmatprep.subr.mxu0 %v3371_v1 }
  0xd4   :  { %3087 = vmatpush3.msk.msra.mxu1 %vm3458_vm0, %v4614_v3  ;;  %3062 = vmatpush3.msra.mxu0 %v3632_v57 }
  0xd5   :  { %3088 = vmatprep.subr.mxu1 %v3371_v1  ;;  %3063 = vmatprep.subr.mxu0 %v3371_v1 }
  0xd6   :  { %3089 = vmatpush3.msk.msra.mxu1 %vm3475_vm1, %v4614_v3  ;;  %3064 = vmatpush3.msra.mxu0 %v3675_v4 }
  0xd7   :  { %3090 = vmatprep.subr.mxu1 %v3371_v1  ;;  %3065 = vmatprep.subr.mxu0 %v3371_v1 }
  0xd8   :  { %3091 = vmatpush3.msk.msra.mxu1 %vm4636_vm11, %v4614_v3  ;;  %3066 = vmatpush3.msra.mxu0 %v3687_v9 }
  0xd9   :  { %3092 = vmatprep.subr.mxu1 %v3371_v1  ;;  %3067 = vmatprep.subr.mxu0 %v3371_v1 }
  0xda   :  { %3093 = vmatpush3.msk.msra.mxu1 %vm3513_vm4, %v4614_v3  ;;  %3068 = vmatpush3.msra.mxu0 %v3730_v25 }
  0xdb   :  { %3094 = vmatprep.subr.mxu1 %v3371_v1  ;;  %3069 = vmatprep.subr.mxu0 %v3371_v1 }
  0xdc   :  { %3095 = vmatpush3.msk.msra.mxu1 %vm4624_vm2, %v4614_v3  ;;  %3070 = vmatpush3.msra.mxu0 %v3732_v28 }
  0xdd   :  { %3096 = vmatprep.subr.mxu1 %v3371_v1  ;;  %3071 = vmatprep.subr.mxu0 %v3371_v1 }
  0xde   :  { %3097 = vmatpush3.msk.msra.mxu1 %vm3565_vm10, %v4614_v3  ;;  %3072 = vmatpush3.msra.mxu0 %v3781_v60 }
  0xdf   :  { %3098 = vmatprep.subr.mxu1 %v3371_v1  ;;  %3073 = vmatprep.subr.mxu0 %v3371_v1 }
  0xe0   :  { %3099 = vmatpush3.msk.msra.mxu1 %vm4618_vm7, %v4614_v3  ;;  %3074 = vmatpush3.msra.mxu0 %v3821_v37 }
  0xe1   :  { %3100 = vmatprep.subr.mxu1 %v3371_v1  ;;  %3075 = vmatprep.subr.mxu0 %v3371_v1 }
  0xe2   :  { %3101 = vmatpush3.msk.msra.mxu1 %vm4621_vm5, %v4614_v3  ;;  %3076 = vmatpush3.msra.mxu0 %v3833_v8 }
  0xe3   :  { %3102 = vmatprep.subr.mxu1 %v3371_v1  ;;  %3077 = vmatprep.subr.mxu0 %v3371_v1 }
  0xe4   :  { %3103 = vmatpush3.msk.msra.mxu1 %vm3648_vm9, %v4614_v3  ;;  %3078 = vmatpush3.msra.mxu0 %v3854_v40 }
  0xe5   :  { %3104 = vmatprep.subr.mxu1 %v3371_v1  ;;  %3079 = vmatprep.subr.mxu0 %v3371_v1 }
  0xe6   :  { %3105 = vmatpush3.msk.msra.mxu1 %vm3668_vm6, %v4614_v3  ;;  %3080 = vmatpush3.msra.mxu0 %v3865_v48 }
  0xe7   :  { %3081 = vmatprep.mubr.msk.f32.mxu0 %vm4620_vm3, %v3371_v1  ;;  %3106 = vmatprep.subr.mxu1 %v3371_v1 }
  0xe8   :  { %3082 = vmatmul.mubr.f32.vlgmr.msra.gmra.mxu0 %v4183_v53  ;;  %3107 = vmatpush3.msk.msra.mxu1 %vm3701_vm15, %v4614_v3 }
  0xe9   :  { %3119 = vmatprep.subr.mxu0 %v3371_v1  ;;  %3108 = vmatprep.subr.mxu1 %v3371_v1 }
  0xea   :  { %3120 = vmatpush3.msra.mxu0 %v3518_v30  ;;  %3109 = vmatpush3.msk.msra.mxu1 %vm3740_vm12, %v4614_v3 }
  0xeb   :  { %3121 = vmatprep.subr.mxu0 %v3371_v1  ;;  %3110 = vmatprep.subr.mxu1 %v3371_v1 }
  0xec   :  { %3122 = vmatpush3.msra.mxu0 %v3538_v34  ;;  %3111 = vmatpush3.msk.msra.mxu1 %vm3761_vm13, %v4614_v3 }
  0xed   :  { %3123 = vmatprep.subr.mxu0 %v3371_v1  ;;  %3112 = vmatprep.subr.mxu1 %v3371_v1 }
  0xee   :  { %3124 = vmatpush3.msra.mxu0 %v3550_v38  ;;  %3113 = vmatpush3.msk.msra.mxu1 %vm3794_vm14, %v4614_v3  ;;  %vm4637_vm14 = vnez %v4567_v14  ;;  %v193_v14 = vmul.u32 32, %v3414_v2  ;;  %v4638_v2 = vld [vmem:[#allocation15_spill] sm:$0xff] }
  0xef   :  { %3125 = vmatprep.subr.mxu0 %v3371_v1  ;;  %3114 = vmatprep.subr.mxu1 %v3371_v1 }
  0xf0   :  { %3126 = vmatpush3.msra.mxu0 %v3570_v42  ;;  %3115 = vmatpush3.msk.msra.mxu1 %vm3811_vm8, %v4614_v3 }
  0xf1   :  { %3116 = vmatprep.mubr.msk.f32.mxu1 %vm4620_vm3, %v3371_v1  ;;  %3127 = vmatprep.subr.mxu0 %v3371_v1 }
  0xf2   :  { %3117 = vmatmul.mubr.f32.vlgmr.msra.gmra.mxu1 %v925_v10  ;;  %3128 = vmatpush3.msra.mxu0 %v3583_v46 }
  0xf3   :  { %3154 = vmatprep.subr.mxu1 %v3371_v1  ;;  %3129 = vmatprep.subr.mxu0 %v3371_v1 }
  0xf4   :  { %3155 = vmatpush3.msk.msra.mxu1 %vm4637_vm14, %v4614_v3  ;;  %3130 = vmatpush3.msra.mxu0 %v3621_v54 }
  0xf5   :  { %3156 = vmatprep.subr.mxu1 %v3371_v1  ;;  %3131 = vmatprep.subr.mxu0 %v3371_v1 }
  0xf6   :  { %3157 = vmatpush3.msk.msra.mxu1 %vm3458_vm0, %v4614_v3  ;;  %3132 = vmatpush3.msra.mxu0 %v3673_v0  ;;  %vm194_vm0 = vcmp.ge.s32.totalorder %v4638_v2, %v193_v14 }
  0xf7   :  { %3158 = vmatprep.subr.mxu1 %v3371_v1  ;;  %3133 = vmatprep.subr.mxu0 %v3371_v1 }
  0xf8   :  { %3159 = vmatpush3.msk.msra.mxu1 %vm3475_vm1, %v4614_v3  ;;  %3134 = vmatpush3.msra.mxu0 %v3706_v13  ;;  %vm197_vm1 = vcmp.lt.s32.totalorder %v4638_v2, %v196_v27 }
  0xf9   :  { %3160 = vmatprep.subr.mxu1 %v3371_v1  ;;  %3135 = vmatprep.subr.mxu0 %v3371_v1 }
  0xfa   :  { %3161 = vmatpush3.msk.msra.mxu1 %vm4636_vm11, %v4614_v3  ;;  %3136 = vmatpush3.msra.mxu0 %v3713_v17  ;;  %vm4399_vm11 = vmand %vm194_vm0, %vm197_vm1 }
  0xfb   :  { %3162 = vmatprep.subr.mxu1 %v3371_v1  ;;  %3137 = vmatprep.subr.mxu0 %v3371_v1  ;;  %v2435_v21 = vsel %vm4399_vm11, 1.0, %v3371_v1 }
  0xfc   :  { %3163 = vmatpush3.msk.msra.mxu1 %vm3513_vm4, %v4614_v3  ;;  %3138 = vmatpush3.msra.mxu0 %v3766_v45  ;;  %v4424_v26 = vsub.f32 %v2435_v21, %v2435_v21  ;;  %vm1485_vm4 = vcmask 64512  }
  0xfd   :  { %3164 = vmatprep.subr.mxu1 %v3371_v1  ;;  %3139 = vmatprep.subr.mxu0 %v3371_v1 }
  0xfe   :  { %3165 = vmatpush3.msk.msra.mxu1 %vm4624_vm2, %v4614_v3  ;;  %3140 = vmatpush3.msra.mxu0 %v3769_v50  ;;  %v4440_v29 = vand.u32 4294901760, %v4424_v26  ;;  %vm4641_vm2 = vnez %v4609_v6 }
  0xff   :  { %3166 = vmatprep.subr.mxu1 %v3371_v1  ;;  %3141 = vmatprep.subr.mxu0 %v3371_v1 }
 0x100   :  { %3167 = vmatpush3.msk.msra.mxu1 %vm3565_vm10, %v4614_v3  ;;  %3142 = vmatpush3.msra.mxu0 %v3816_v19  ;;  %v1599_v30 = vsub.f32 %v4424_v26, %v4440_v29 }
 0x101   :  { %3168 = vmatprep.subr.mxu1 %v3371_v1  ;;  %3143 = vmatprep.subr.mxu0 %v3371_v1 }
 0x102   :  { %3169 = vmatpush3.msk.msra.mxu1 %vm4618_vm7, %v4614_v3  ;;  %3144 = vmatpush3.msra.mxu0 %v3841_v58  ;;  %v1600_v31 = vand.u32 4294901760, %v1599_v30 }
 0x103   :  { %3170 = vmatprep.subr.mxu1 %v3371_v1  ;;  %3145 = vmatprep.subr.mxu0 %v3371_v1 }
 0x104   :  { %3171 = vmatpush3.msk.msra.mxu1 %vm4621_vm5, %v4614_v3  ;;  %3146 = vmatpush3.msra.mxu0 %v3852_v18 }
 0x105   :  { %3172 = vmatprep.subr.mxu1 %v3371_v1  ;;  %3147 = vmatprep.subr.mxu0 %v3371_v1 }
 0x106   :  { %3173 = vmatpush3.msk.msra.mxu1 %vm3648_vm9, %v4614_v3  ;;  %3148 = vmatpush3.msra.mxu0 %v3872_v62 }
 0x107   :  { %3174 = vmatprep.subr.mxu1 %v3371_v1  ;;  %3149 = vmatprep.subr.mxu0 %v3371_v1 }
 0x108   :  { %3175 = vmatpush3.msk.msra.mxu1 %vm3668_vm6, %v4614_v3  ;;  %3150 = vmatpush3.msra.mxu0 %v3881_v55 }
 0x109   :  { %3151 = vmatprep.mubr.msk.f32.mxu0 %vm4620_vm3, %v3371_v1  ;;  %3176 = vmatprep.subr.mxu1 %v3371_v1 }
 0x10a   :  { %3152 = vmatmul.mubr.f32.vlgmr.msra.gmra.mxu0 %v4168_v5  ;;  %3177 = vmatpush3.msk.msra.mxu1 %vm3701_vm15, %v4614_v3 }
 0x10b   :  { %3186 = vmatprep.mubr.msk.f32.mxu1 %vm4620_vm3, %v3371_v1  ;;  %3178 = vmatprep.subr.mxu1 %v3371_v1 }
 0x10c   :  { %3189 = vmatprep.subr.mxu0 %v3371_v1  ;;  %3179 = vmatpush3.msk.msra.mxu1 %vm3740_vm12, %v4614_v3 }
 0x10d   :  { %3190 = vmatpush3.msk.msra.mxu0 %vm4399_vm11, %v4614_v3  ;;  %3180 = vmatprep.subr.mxu1 %v3371_v1 }
 0x10e   :  { %3191 = vmatprep.mubr.msk.f32.mxu0 %vm4620_vm3, %v3371_v1  ;;  %3181 = vmatpush3.msk.msra.mxu1 %vm3761_vm13, %v4614_v3 }
 0x10f   :  { %3199 = vmatprep.subr.mxu0 %v3371_v1  ;;  %3182 = vmatprep.subr.mxu1 %v3371_v1 }
 0x110   :  { %3183 = vmatpush3.msk.msra.mxu1 %vm4641_vm2, %v4614_v3 }
 0x111   :  { %3184 = vmatprep.subr.mxu1 %v3371_v1 }
 0x112   :  { %3185 = vmatpush3.msk.msra.mxu1 %vm3811_vm8, %v4614_v3 }
 0x113   :  { %3187 = vmatmul.mubr.f32.vlgmr.msra.gmra.mxu1 %v4168_v5  ;;  %3194 = vmatprep.subr.mxu1 %v3371_v1 }
 0x114   :  { %3195 = vmatpush3.msra.mxu1 %v1600_v31  ;;  %3196 = vmatprep.mubr.msk.f32.mxu1 %vm4620_vm3, %v3371_v1 }
 0x115   :  { %3204 = vmatprep.subr.mxu1 %v3371_v1 }
 0x125   :  { %v288_v33 = vpop.f32.mrf.mxu0 }
 0x126   :  { %v439_v35 = vpop.f32.mrf.mxu1 }
 0x127   :  { %v2803_v34 = vpop.f32.mrf.mxu0  ;;  %v440_v47 = vadd.f32 %v439_v35, %v288_v33 }
 0x128   :  { %v2838_v38 = vpop.f32.mrf.mxu1 }
 0x145   :  { %v543_v39 = vpop.f32.mrf.mxu0 }
 0x146   :  { %v544_v49 = vadd.f32 %v543_v39, %v440_v47 }
 0x147   :  { %v2873_v41 = vpop.f32.mrf.mxu0 }
 0x148   :  { %v1942_v41 = vstv %s2536_s6 }
 0x14a   :  { %v632_v42 = vpop.f32.mrf.mxu1 }
 0x14b   :  { %v633_v52 = vadd.f32 %v632_v42, %v544_v49 }
 0x14c   :  { %v2908_v44 = vpop.f32.mrf.mxu1 }
 0x165   :  { %v751_v46 = vpop.f32.mrf.mxu0 }
 0x166   :  { %v752_v54 = vadd.f32 %v751_v46, %v633_v52 }
 0x167   :  { %v2943_v48 = vpop.f32.mrf.mxu0 }
 0x16e   :  { %v838_v57 = vpop.f32.mrf.mxu1 }
 0x16f   :  { %v839_v58 = vadd.f32 %v838_v57, %v752_v54 }
 0x170   :  { %v2978_v59 = vpop.f32.mrf.mxu1 }
 0x171   :  { %v1487_v63 = vsel %vm1485_vm4, %v839_v58, 0 }
 0x172   :  { %v1555_v0 = vand.u32 4294901760, %v1487_v63 }
 0x174   :  { %v1556_v4 = vsub.f32 %v1487_v63, %v1555_v0  ;;  %3197 = vmatmul.mubr.f32.vlgmr.msra.gmra.mxu1 %v1555_v0 }
 0x175   :  { %3205 = vmatpush3.msk.msra.mxu1 %vm4399_vm11, %v4614_v3  ;;  %3206 = vmatprep.mubr.msk.f32.mxu1 %vm4620_vm3, %v3371_v1 }
 0x176   :  { %v1557_v8 = vand.u32 4294901760, %v1556_v4  ;;  %3214 = vmatprep.subr.mxu1 %v3371_v1 }
 0x178   :  { %3207 = vmatmul.mubr.f32.vlgmr.msra.gmra.mxu1 %v1557_v8  ;;  %v1558_v9 = vsub.f32 %v1556_v4, %v1557_v8 }
 0x179   :  { %3215 = vmatpush3.msk.msra.mxu1 %vm4399_vm11, %v4614_v3  ;;  %3216 = vmatprep.mubr.msk.f32.mxu1 %vm4620_vm3, %v3371_v1 }
 0x17a   :  { %v1559_v11 = vand.u32 4294901760, %v1558_v9  ;;  %3224 = vmatprep.subr.mxu1 %v3371_v1 }
 0x17c   :  { %3192 = vmatmul.mubr.f32.vlgmr.msra.gmra.mxu0 %v1559_v11  ;;  %3217 = vmatmul.mubr.f32.vlgmr.msra.gmra.mxu1 %v1555_v0 }
 0x17d   :  { %3200 = vmatpush3.msra.mxu0 %v4424_v26  ;;  %3201 = vmatprep.mubr.msk.f32.mxu0 %vm4620_vm3, %v3371_v1 }
 0x17e   :  { %3209 = vmatprep.subr.mxu0 %v3371_v1  ;;  %3225 = vmatpush3.msra.mxu1 %v1600_v31 }
 0x17f   :  { %3226 = vmatprep.mubr.msk.f32.mxu1 %vm4620_vm3, %v3371_v1  ;;  %3234 = vmatprep.subr.mxu1 %v3371_v1 }
 0x180   :  { %3202 = vmatmul.mubr.f32.vlgmr.msra.gmra.mxu0 %v1556_v4 }
 0x181   :  { %3210 = vmatpush3.msra.mxu0 %v4440_v29  ;;  %3211 = vmatprep.mubr.msk.f32.mxu0 %vm4620_vm3, %v3371_v1 }
 0x182   :  { %3219 = vmatprep.subr.mxu0 %v3371_v1 }
 0x184   :  { %3212 = vmatmul.mubr.f32.vlgmr.msra.gmra.mxu0 %v1555_v0 }
 0x185   :  { %3220 = vmatpush3.msk.msra.mxu0 %vm4399_vm11, %v4614_v3  ;;  %3221 = vmatprep.mubr.msk.f32.mxu0 %vm4620_vm3, %v3371_v1 }
 0x186   :  { %3229 = vmatprep.subr.mxu0 %v3371_v1 }
 0x187   :  { %v929_v13 = vpop.f32.mrf.mxu0 }
 0x189   :  { %v3013_v17 = vpop.f32.mrf.mxu0 }
 0x190   :  { %v1080_v25 = vpop.f32.mrf.mxu1 }
 0x191   :  { %v1081_v60 = vadd.f32 %v1080_v25, %v929_v13 }
 0x192   :  { %v3048_v28 = vpop.f32.mrf.mxu1 }
 0x1a8   :  { %v1184_v32 = vpop.f32.mrf.mxu0 }
 0x1a9   :  { %v1185_v6 = vadd.f32 %v1184_v32, %v1081_v60 }
 0x1aa   :  { %v3083_v40 = vpop.f32.mrf.mxu0 }
 0x1ab   :  { %v3265_v40 = vld [vmem:[#allocation2] sm:$0xf] }
 0x1b2   :  { %v1273_v43 = vpop.f32.mrf.mxu1 }
 0x1b3   :  { %v1274_v12 = vadd.f32 %v1273_v43, %v1185_v6 }
 0x1b4   :  { %v3118_v45 = vpop.f32.mrf.mxu1 }
 0x1b5   :  { %v3266_v45 = vld [vmem:[#allocation6] sm:$0xf] }
 0x1ca   :  { %v1392_v50 = vpop.f32.mrf.mxu0 }
 0x1cb   :  { %v1393_v19 = vadd.f32 %v1392_v50, %v1274_v12 }
 0x1cc   :  { %v3153_v55 = vpop.f32.mrf.mxu0 }
 0x1d3   :  { %v1479_v24 = vpop.f32.mrf.mxu1 }
 0x1d4   :  { %v1480_v37 = vadd.f32 %v1479_v24, %v1393_v19 }
 0x1d5   :  { %v3188_v18 = vpop.f32.mrf.mxu1 }
 0x1d6   :  { %v1944_v62 = vsel %vm1485_vm4, %v1480_v37, 0 }
 0x1d7   :  { %v2012_v61 = vand.u32 4294901760, %v1944_v62 }
 0x1d9   :  { %v2013_v36 = vsub.f32 %v1944_v62, %v2012_v61  ;;  %3227 = vmatmul.mubr.f32.vlgmr.msra.gmra.mxu1 %v2012_v61 }
 0x1da   :  { %3235 = vmatpush3.msk.msra.mxu1 %vm4399_vm11, %v4614_v3  ;;  %3236 = vmatprep.mubr.msk.f32.mxu1 %vm4620_vm3, %v3371_v1 }
 0x1db   :  { %v2014_v5 = vand.u32 4294901760, %v2013_v36  ;;  %3244 = vmatprep.subr.mxu1 %v3371_v1 }
 0x1dd   :  { %3237 = vmatmul.mubr.f32.vlgmr.msra.gmra.mxu1 %v2014_v5  ;;  %v2015_v53 = vsub.f32 %v2013_v36, %v2014_v5 }
 0x1de   :  { %3245 = vmatpush3.msk.msra.mxu1 %vm4399_vm11, %v4614_v3  ;;  %3246 = vmatprep.mubr.msk.f32.mxu1 %vm4620_vm3, %v3371_v1 }
 0x1df   :  { %v2016_v10 = vand.u32 4294901760, %v2015_v53 }
 0x1e1   :  { %3222 = vmatmul.mubr.f32.vlgmr.msra.gmra.mxu0 %v2016_v10  ;;  %3247 = vmatmul.mubr.f32.vlgmr.msra.gmra.mxu1 %v2012_v61 }
 0x1e2   :  { %3230 = vmatpush3.msra.mxu0 %v4424_v26  ;;  %3231 = vmatprep.mubr.msk.f32.mxu0 %vm4620_vm3, %v3371_v1 }
 0x1e3   :  { %3239 = vmatprep.subr.mxu0 %v3371_v1 }
 0x1e5   :  { %3232 = vmatmul.mubr.f32.vlgmr.msra.gmra.mxu0 %v2013_v36 }
 0x1e6   :  { %3240 = vmatpush3.msra.mxu0 %v4440_v29  ;;  %3241 = vmatprep.mubr.msk.f32.mxu0 %vm4620_vm3, %v3371_v1 }
 0x1e9   :  { %3242 = vmatmul.mubr.f32.vlgmr.msra.gmra.mxu0 %v2012_v61 }
 0x234   :  { %v1637_v3 = vpop.f32.mrf.mxu1 }
 0x236   :  { %v3198_v7 = vpop.f32.mrf.mxu1 }
 0x238   :  { %v1785_v15 = vpop.f32.mrf.mxu1 }
 0x23a   :  { %v3208_v51 = vpop.f32.mrf.mxu1 }
 0x23c   :  { %v1561_v56 = vpop.f32.mrf.mxu0  ;;  %v1931_v20 = vpop.f32.mrf.mxu1 }
 0x23d   :  { %v1562_v22 = vadd.f32 %v1561_v56, %v1484_v23 }
 0x23e   :  { %v3193_v14 = vpop.f32.mrf.mxu0  ;;  %v3218_v27 = vpop.f32.mrf.mxu1 }
 0x23f   :  { %v1638_v2 = vadd.f32 %v1637_v3, %v1562_v22 }
 0x240   :  { %v1711_v16 = vpop.f32.mrf.mxu0 }
 0x241   :  { %v1712_v21 = vadd.f32 %v1711_v16, %v1638_v2 }
 0x242   :  { %v3203_v26 = vpop.f32.mrf.mxu0 }
 0x243   :  { %v1786_v29 = vadd.f32 %v1785_v15, %v1712_v21 }
 0x244   :  { %v1859_v30 = vpop.f32.mrf.mxu0 }
 0x245   :  { %v1860_v31 = vadd.f32 %v1859_v30, %v1786_v29 }
 0x246   :  { %v3213_v1 = vpop.f32.mrf.mxu0 }
 0x247   :  { %v1932_v33 = vadd.f32 %v1931_v20, %v1860_v31 }
 0x249   :  { %v2535_v54 = vmul.f32 -1.442695, %v1932_v33 }
 0x24b   :  { %3257 = vpow2.f32 %v2535_v54 }
 0x258   :  { %v3258_v11 = vpop.eup %3257 }
 0x259   :  { %v1938_v13 = vadd.f32 1.0, %v3258_v11 }
 0x299   :  { %v2094_v34 = vpop.f32.mrf.mxu1 }
 0x29b   :  { %v3228_v35 = vpop.f32.mrf.mxu1 }
 0x29d   :  { %v2242_v38 = vpop.f32.mrf.mxu1 }
 0x29f   :  { %v3238_v39 = vpop.f32.mrf.mxu1 }
 0x2a1   :  { %v2018_v42 = vpop.f32.mrf.mxu0  ;;  %v2388_v44 = vpop.f32.mrf.mxu1 }
 0x2a2   :  { %v2019_v46 = vadd.f32 %v2018_v42, %v1942_v41 }
 0x2a3   :  { %v3223_v47 = vpop.f32.mrf.mxu0  ;;  %v3248_v48 = vpop.f32.mrf.mxu1 }
 0x2a4   :  { %v2095_v49 = vadd.f32 %v2094_v34, %v2019_v46 }
 0x2a5   :  { %v2168_v52 = vpop.f32.mrf.mxu0 }
 0x2a6   :  { %v2169_v57 = vadd.f32 %v2168_v52, %v2095_v49 }
 0x2a7   :  { %v3233_v58 = vpop.f32.mrf.mxu0 }
 0x2a8   :  { %v2243_v59 = vadd.f32 %v2242_v38, %v2169_v57 }
 0x2a9   :  { %v2316_v63 = vpop.f32.mrf.mxu0 }
 0x2aa   :  { %v2317_v0 = vadd.f32 %v2316_v63, %v2243_v59 }
 0x2ab   :  { %v3243_v4 = vpop.f32.mrf.mxu0 }
 0x2ac   :  { %v2389_v8 = vadd.f32 %v2388_v44, %v2317_v0 }
 0x2ae   :  { %v2540_v9 = vmul.f32 -1.442695, %v2389_v8 }
 0x2b0   :  { %3259 = vpow2.f32 %v2540_v9 }
 0x2b1   :  { %3261 = vrcp.f32 %v1938_v13 }
 0x2bd   :  { %v3260_v17 = vpop.eup %3259 }
 0x2be   :  { %v2395_v25 = vadd.f32 1.0, %v3260_v17  ;;  %v3262_v28 = vpop.eup %3261 }
 0x2bf   :  { %v2398_v43 = vmul.f32 %v3265_v40, %v3262_v28 }
 0x2c0   :  { %3263 = vrcp.f32 %v2395_v25 }
 0x2cd   :  { %v3264_v32 = vpop.eup %3263 }
 0x2ce   :  { %v2399_v50 = vmul.f32 %v3266_v45, %v3264_v32 }
 0x2d0   :  { %v2400_v55 = vadd.f32 %v2399_v50, %v2398_v43 }
 0x2d2   :  { %2401 = vst [vmem:[#allocation10] sm:$0xf] %v2400_v55 }
 0x2d3   :  { %3350 = shalt.err (!%p3347_p10)
}
 0x2d4   :  { %2411 = dma.vmem_to_hbm [thread:$0]  %s2409_s8, 64, %s4535_s4, [#allocation4]  }
 0x2d5   :  { %3365 = dma.done.wait [#allocation4], 64  }
 0x2d6   :  { %3366 = vsyncadd [#allocation4], 4294967232 }
 0x2d7   :  { %2415 = vsyncpa [#allocation3], 1 }
 0x2d8   :  { %2416 = vsyncpa [#allocation7], 1 }
 0x2d9   :  { %2417 = vsyncpa [#allocation4], 1 }
 0x2da   :  { %2418 = vsyncpa [#allocation5], 1 }

</bundles_post_ra>
